<compile_context>
chip_gen: v5e
topology: v5e:2x2
jax: 0.10.0
libtpu: 0.0.40
codegen_flags: <defaults>
</compile_context>

<pallas_src>
import functools

import jax
import jax.numpy as jnp
from jax.experimental import pallas as pl
from jax.experimental.pallas import tpu as pltpu

_ROW_GRAN = 32          # row-tile granularity (covers f32/bf16/int8 sublane packing)
_COL_GRAN = 128         # lane-tile granularity
_MSE_LANES = 1024       # 8 x 128: MSE tensors are flattened/zero-padded to rows of this width


def _cdiv(a, b):
    return (a + b - 1) // b


def _round_up(x, m):
    return _cdiv(x, m) * m


def _round_down(x, m):
    return (x // m) * m


@functools.lru_cache(maxsize=None)
def _tpu_budgets():
    """(combined input-block byte target per grid step, vmem_limit_bytes), per generation."""
    try:
        vmem_cap = int(pltpu.get_tpu_info().vmem_capacity_bytes)
    except Exception:
        vmem_cap = 64 * 1024 * 1024
    if vmem_cap >= 96 * 1024 * 1024:           # v5e / v6e: 128 MiB physical VMEM
        return 8 * 1024 * 1024, 64 * 1024 * 1024
    return 4 * 1024 * 1024, 32 * 1024 * 1024   # v7x: 64 MiB physical VMEM


@functools.lru_cache(maxsize=None)
def _num_tensorcores():
    """Best-effort TensorCore count; conservatively 1 (correct for v5e/v6e)."""
    try:
        info = pltpu.get_tpu_info()
        for attr in ("tensorcore_count", "num_tensorcores", "tensorcores_per_chip",
                     "num_cores"):
            v = getattr(info, attr, None)
            if isinstance(v, int) and v > 0:
                return v
    except Exception:
        pass
    return 1


def _tiling(total, bytes_per_unit, gran, max_tile=None):
    """Pick the largest gran-aligned tile under the per-step byte budget (or the full
    extent for small inputs), and the core split for multi-TensorCore chips."""
    target, vmem_limit = _tpu_budgets()
    tmax = max(gran, _round_down(target // max(bytes_per_unit, 1), gran))
    if max_tile is not None:                       # test hook: force the multi-tile path
        tmax = min(tmax, max(gran, _round_down(max_tile, gran)))
    t = total if total <= tmax else tmax
    num_tiles = _cdiv(total, t)
    ncores = _num_tensorcores()
    nsplit = ncores if (ncores > 1 and num_tiles >= ncores) else 1
    tps = _cdiv(num_tiles, nsplit)
    exact = (num_tiles * t == total) and (nsplit * tps == num_tiles)
    return t, num_tiles, nsplit, tps, (not exact), vmem_limit


def _dim_semantics(nsplit):
    # CORE_PARALLEL only when the split is real; "parallel" strings do not change codegen.
    first = pltpu.CORE_PARALLEL if nsplit > 1 else pltpu.ARBITRARY
    return (first, pltpu.ARBITRARY)


def _split_map(tps, num_tiles, col_axis):
    # Clamp so no block starts past the array end; overhanging duplicate tiles
    # (num_tiles % nsplit != 0) are fully masked in-kernel.
    if col_axis:
        return lambda c, j: (0, jnp.minimum(c * tps + j, num_tiles - 1))
    return lambda c, j: (jnp.minimum(c * tps + j, num_tiles - 1), 0)


# ----------------------------------------------------------------------------
# Fused multi-head cross-entropy:  sum_h mean_i CE(logits[:, off_h:off_h+C_h], labels[:, h])
# Class-major, lane-dense layout: logits_t (c_tot, N), labels_t (n_heads, N).
# ----------------------------------------------------------------------------
def _ce_kernel(logits_ref, labels_ref, out_ref, acc_ref, *,
               n_cols, heads, tile_cols, tiles_per_split, num_tiles, need_mask):
    c = pl.program_id(0)
    j = pl.program_id(1)

    @pl.when(j == 0)
    def _init():
        acc_ref[...] = jnp.zeros_like(acc_ref)

    logits = logits_ref[...].astype(jnp.float32)        # (c_tot, tile_cols) class-major
    labels = labels_ref[...]                            # (n_heads, tile_cols) int32

    if need_mask:
        tile_lin = c * tiles_per_split + j
        cols = tile_lin * tile_cols + jax.lax.broadcasted_iota(
            jnp.int32, (1, tile_cols), 1)
        valid = jnp.logical_and(cols < n_cols, tile_lin < num_tiles)
        logits = jnp.where(valid, logits, 0.0)           # mask inputs -> no NaN/Inf ever
        labels = jnp.where(valid, labels, 0)

    total = jnp.zeros((1, tile_cols), jnp.float32)
    for h, (off, cdim) in enumerate(heads):              # static, tiny per-head loop
        lab = labels[h:h + 1, :]
        m = logits[off:off + 1, :]
        for k in range(1, cdim):                         # unrolled max over <=cdim sublane rows
            m = jnp.maximum(m, logits[off + k:off + k + 1, :])
        sum_exp = jnp.zeros((1, tile_cols), jnp.float32)
        picked = jnp.zeros((1, tile_cols), jnp.float32)
        for k in range(cdim):
            row = logits[off + k:off + k + 1, :]
            sum_exp = sum_exp + jnp.exp(row - m)         # EUP, full lane occupancy
            picked = picked + jnp.where(lab == k, row, 0.0)   # VPU compare/select, no XLU
        total = total + (m + jnp.log(sum_exp) - picked)

    if need_mask:
        total = jnp.where(valid, total, 0.0)

    acc_ref[...] += jnp.sum(total)                       # one cross-lane reduce per (fat) tile

    @pl.when(j == pl.num_programs(1) - 1)
    def _finalize():
        out_ref[...] = jnp.broadcast_to(acc_ref[...], (8, 128))


def fused_cross_entropy_sum(logits, labels, class_dims, max_tile_cols=None):
    """Sum over heads of mean CrossEntropy (PyTorch semantics), one fused Pallas pass."""
    n, c_tot = logits.shape
    n_heads = len(class_dims)

    heads = []
    off = 0
    for cd in class_dims:
        heads.append((int(off), int(cd)))
        off += int(cd)
    heads = tuple(heads)
    assert off <= c_tot

    # Host transpose to the class-major, lane-dense layout (cheap: tiny class dim).
    logits_t = logits.T                                  # (c_tot, N), native dtype
    labels_t = labels.astype(jnp.int32).T                # (n_heads, N)

    bytes_per_col = (_round_up(c_tot, 8) + _round_up(n_heads, 8)) * 4   # sublane-padded VMEM
    tc, num_tiles, nsplit, tps, need_mask, vmem_limit = _tiling(
        n, bytes_per_col, _COL_GRAN, max_tile=max_tile_cols)
    col_map = _split_map(tps, num_tiles, col_axis=True)

    kernel = functools.partial(
        _ce_kernel, n_cols=n, heads=heads, tile_cols=tc,
        tiles_per_split=tps, num_tiles=num_tiles, need_mask=need_mask)

    out = pl.pallas_call(
        kernel,
        out_shape=jax.ShapeDtypeStruct((nsplit * 8, 128), jnp.float32),
        grid=(nsplit, tps),
        in_specs=[
            pl.BlockSpec((c_tot, tc), col_map),
            pl.BlockSpec((n_heads, tc), col_map),
        ],
        out_specs=pl.BlockSpec((8, 128), lambda c, j: (c, 0)),
        scratch_shapes=[pltpu.VMEM((1, 128), jnp.float32)],
        compiler_params=pltpu.CompilerParams(
            dimension_semantics=_dim_semantics(nsplit),
            vmem_limit_bytes=vmem_limit),
        cost_estimate=pl.CostEstimate(
            flops=int(8 * n * c_tot),
            transcendentals=int(n * (c_tot + n_heads)),
            bytes_accessed=int(n * c_tot * logits.dtype.itemsize + n * n_heads * 4
                               + nsplit * 8 * 128 * 4)),
    )(logits_t, labels_t)

    return out[0::8, 0].sum() / float(n)


# ----------------------------------------------------------------------------
# MSE (mean reduction), equivalent to nn.MSELoss()(output, y_true.float())
# ----------------------------------------------------------------------------
def _mse_kernel(pred_ref, true_ref, out_ref, acc_ref, *,
                n_rows, tile_rows, tiles_per_split, num_tiles, need_mask):
    c = pl.program_id(0)
    j = pl.program_id(1)

    @pl.when(j == 0)
    def _init():
        acc_ref[...] = jnp.zeros_like(acc_ref)

    d = pred_ref[...].astype(jnp.float32) - true_ref[...].astype(jnp.float32)
    if need_mask:
        tile_lin = c * tiles_per_split + j
        rows = tile_lin * tile_rows + jax.lax.broadcasted_iota(
            jnp.int32, (tile_rows, 1), 0)
        valid = jnp.logical_and(rows < n_rows, tile_lin < num_tiles)
        d = jnp.where(valid, d, 0.0)                     # mask inputs, not results
    acc_ref[...] += jnp.sum(d * d)                       # single-vreg accumulator

    @pl.when(j == pl.num_programs(1) - 1)
    def _finalize():
        out_ref[...] = jnp.broadcast_to(acc_ref[...], (8, 128))


def mse_mean(pred, target, max_tile_rows=None):
    """Mean squared error with PyTorch nn.MSELoss() semantics."""
    total = int(pred.size)
    pad = (-total) % _MSE_LANES
    flat_p = pred.reshape(-1)
    flat_t = target.reshape(-1)
    if pad:
        # Zero padding keeps the lane-dense tiled path: padded diffs are exactly 0 and the
        # mean divides by the true element count below.
        flat_p = jnp.concatenate([flat_p, jnp.zeros((pad,), flat_p.dtype)])
        flat_t = jnp.concatenate([flat_t, jnp.zeros((pad,), flat_t.dtype)])
    rows = (total + pad) // _MSE_LANES
    pred2 = flat_p.reshape(rows, _MSE_LANES)
    targ2 = flat_t.reshape(rows, _MSE_LANES)

    bytes_per_row = 2 * _MSE_LANES * 4
    tr, num_tiles, nsplit, tps, need_mask, vmem_limit = _tiling(
        rows, bytes_per_row, _ROW_GRAN, max_tile=max_tile_rows)
    row_map = _split_map(tps, num_tiles, col_axis=False)

    kernel = functools.partial(
        _mse_kernel, n_rows=rows, tile_rows=tr,
        tiles_per_split=tps, num_tiles=num_tiles, need_mask=need_mask)

    out = pl.pallas_call(
        kernel,
        out_shape=jax.ShapeDtypeStruct((nsplit * 8, 128), jnp.float32),
        grid=(nsplit, tps),
        in_specs=[
            pl.BlockSpec((tr, _MSE_LANES), row_map),
            pl.BlockSpec((tr, _MSE_LANES), row_map),
        ],
        out_specs=pl.BlockSpec((8, 128), lambda c, j: (c, 0)),
        scratch_shapes=[pltpu.VMEM((1, 128), jnp.float32)],
        compiler_params=pltpu.CompilerParams(
            dimension_semantics=_dim_semantics(nsplit),
            vmem_limit_bytes=vmem_limit),
        cost_estimate=pl.CostEstimate(
            flops=int(3 * total),
            transcendentals=0,
            bytes_accessed=int(total * (pred.dtype.itemsize + target.dtype.itemsize)
                               + nsplit * 8 * 128 * 4)),
    )(pred2, targ2)

    return out[0::8, 0].sum() / float(total)


# ----------------------------------------------------------------------------
# Module-level forward (Pallas-backed)
# ----------------------------------------------------------------------------
class BaseMultiTaskLossPallas:
    """Pallas-backed equivalent of BaseMultiTaskLoss.forward."""

    def __init__(self, task_class_dims):
        self.task_class_dims = {k: [int(c) for c in v] for k, v in task_class_dims.items()}

    def __call__(self, x, y_true, output):
        task_type = x["task_type"]
        task_name = x["task_name"]
        if task_type in ("classification", "sequence labeling"):
            class_dims = self.task_class_dims[task_name]
            if task_type == "sequence labeling":
                # Ragged per-sequence concatenation stays plain-JAX glue, mirroring the
                # torch.cat / np.vstack glue in the PyTorch reference forward.
                outs = list(output)
                y_true = jnp.concatenate(
                    [t[: o.shape[0]] for t, o in zip(y_true, outs)], axis=0)
                output = jnp.concatenate(outs, axis=0)
            # TODO(synk): PyTorch CrossEntropyLoss ignore_index=-100 semantics are not
            # reproduced; labels are assumed to be valid class indices in [0, C).
            return fused_cross_entropy_sum(output, y_true, class_dims)
        elif task_type == "regression":
            return mse_mean(output, y_true)
        else:
            raise ValueError


class EqualWeightMultiTaskLossPallas(BaseMultiTaskLossPallas):
    """Base-class loss divided by the total number of tasks (EqualWeightMultiTaskLoss)."""

    def __call__(self, x, y_true, output):
        return super().__call__(x, y_true, output) / float(len(self.task_class_dims))


# ----------------------------------------------------------------------------
# Pure-JAX references for correctness checks
# ----------------------------------------------------------------------------
def _ce_ref(logits, labels):
    logits = logits.astype(jnp.float32)
    lse = jax.nn.logsumexp(logits, axis=-1)
    picked = jnp.take_along_axis(logits, labels.astype(jnp.int32)[:, None], axis=-1)[:, 0]
    return jnp.mean(lse - picked)


if __name__ == "__main__":
    key = jax.random.PRNGKey(0)
    keys = jax.random.split(key, 16)

    task_class_dims = {
        "emotions": [3, 4],   # classification, two heads
        "tagging": [3, 4],    # sequence labeling, two heads
        "humor": [1],         # regression
    }
    n_tasks = len(task_class_dims)
    loss_fn = EqualWeightMultiTaskLossPallas(task_class_dims)

    # --- classification (small: single exact tile, unmasked path) -------------------
    N, D = 10, sum(task_class_dims["emotions"])
    cls_output = jax.random.normal(keys[0], (N, D), dtype=jnp.float32)
    cls_labels = jnp.stack(
        [jax.random.randint(keys[1], (N,), 0, 3),
         jax.random.randint(keys[2], (N,), 0, 4)], axis=1).astype(jnp.int32)
    x_cls = {"task_type": "classification", "task_name": "emotions"}
    loss_cls = jax.block_until_ready(loss_fn(x_cls, cls_labels, cls_output))
    ref_cls = (_ce_ref(cls_output[:, 0:3], cls_labels[:, 0])
               + _ce_ref(cls_output[:, 3:7], cls_labels[:, 1])) / n_tasks
    assert jnp.allclose(loss_cls, ref_cls, atol=1e-4), (loss_cls, ref_cls)

    # --- classification (multi-tile + ragged lane mask path, small forced tiles) ----
    N2 = 300
    big_output = jax.random.normal(keys[3], (N2, D), dtype=jnp.float32)
    big_labels = jnp.stack(
        [jax.random.randint(keys[4], (N2,), 0, 3),
         jax.random.randint(keys[5], (N2,), 0, 4)], axis=1).astype(jnp.int32)
    loss_big = jax.block_until_ready(
        fused_cross_entropy_sum(big_output, big_labels, task_class_dims["emotions"],
                                max_tile_cols=128))
    ref_big = (_ce_ref(big_output[:, 0:3], big_labels[:, 0])
               + _ce_ref(big_output[:, 3:7], big_labels[:, 1]))
    assert jnp.allclose(loss_big, ref_big, rtol=1e-4, atol=1e-3), (loss_big, ref_big)

    # --- sequence labeling -----------------------------------------------------------
    seq_lens = [5, 7, 4]
    seq_out, seq_true = [], []
    kk = keys[6]
    for L in seq_lens:
        kk, ka, kb, kc = jax.random.split(kk, 4)
        seq_out.append(jax.random.normal(ka, (L, D), dtype=jnp.float32))
        seq_true.append(
            jnp.stack([jax.random.randint(kb, (L,), 0, 3),
                       jax.random.randint(kc, (L,), 0, 4)], axis=1).astype(jnp.int32))
    x_seq = {"task_type": "sequence labeling", "task_name": "tagging"}
    loss_seq = jax.block_until_ready(loss_fn(x_seq, seq_true, seq_out))
    cat_out = jnp.concatenate(seq_out, axis=0)
    cat_lab = jnp.concatenate(seq_true, axis=0)
    ref_seq = (_ce_ref(cat_out[:, 0:3], cat_lab[:, 0])
               + _ce_ref(cat_out[:, 3:7], cat_lab[:, 1])) / n_tasks
    assert jnp.allclose(loss_seq, ref_seq, atol=1e-4), (loss_seq, ref_seq)

    # --- regression (small, zero-pad path to one 1024-lane row) ----------------------
    reg_pred = jax.random.normal(keys[7], (8, 4), dtype=jnp.float32)
    reg_true = jax.random.normal(keys[8], (8, 4), dtype=jnp.float32)
    x_reg = {"task_type": "regression", "task_name": "humor"}
    loss_reg = jax.block_until_ready(loss_fn(x_reg, reg_true, reg_pred))
    ref_reg = jnp.mean((reg_pred - reg_true) ** 2) / n_tasks
    assert jnp.allclose(loss_reg, ref_reg, atol=1e-5), (loss_reg, ref_reg)

    # --- regression (exact lane-dense reshape, no padding) ---------------------------
    big_pred = jax.random.normal(keys[9], (64, 256), dtype=jnp.float32)
    big_true = jax.random.normal(keys[10], (64, 256), dtype=jnp.float32)
    loss_reg_big = jax.block_until_ready(mse_mean(big_pred, big_true))
    ref_reg_big = jnp.mean((big_pred - big_true) ** 2)
    assert jnp.allclose(loss_reg_big, ref_reg_big, rtol=1e-5, atol=1e-5), (
        loss_reg_big, ref_reg_big)

    # --- regression (zero-pad + multi-tile + row mask path, small forced tiles) ------
    odd_pred = jax.random.normal(keys[11], (67, 515), dtype=jnp.float32)
    odd_true = jax.random.normal(keys[12], (67, 515), dtype=jnp.float32)
    loss_reg_odd = jax.block_until_ready(mse_mean(odd_pred, odd_true, max_tile_rows=32))
    ref_reg_odd = jnp.mean((odd_pred - odd_true) ** 2)
    assert jnp.allclose(loss_reg_odd, ref_reg_odd, rtol=1e-5, atol=1e-5), (
        loss_reg_odd, ref_reg_odd)

    print("KERNEL_OK")
</pallas_src>

<mosaic_0001>
module attributes {stable_mosaic.version = 11 : i64} {
  func.func @_ce_kernel(%arg0: i32, %arg1: i32, %arg2: memref<7x10xf32, #tpu.memory_space<vmem>>, %arg3: memref<2x10xi32, #tpu.memory_space<vmem>>, %arg4: memref<8x128xf32, #tpu.memory_space<vmem>>, %arg5: memref<1x128xf32, #tpu.memory_space<vmem>>) attributes {dimension_semantics = [#tpu.dimension_semantics<arbitrary>, #tpu.dimension_semantics<arbitrary>], iteration_bounds = array<i64: 1, 1>, scalar_prefetch = 0 : i64, scratch_operands = 1 : i64, tpu.core_type = #tpu.core_type<tc>, window_params = [{transform_indices = @transform_0, window_bounds = array<i64: 7, 10>}, {transform_indices = @transform_1, window_bounds = array<i64: 2, 10>}, {transform_indices = @transform_2, window_bounds = array<i64: 8, 128>}]} {
    %c0_i32 = arith.constant 0 : i32
    %0 = arith.cmpi eq, %arg1, %c0_i32 : i32
    %1 = arith.extui %0 : i1 to i32
    %c0_i32_0 = arith.constant 0 : i32
    %2 = arith.cmpi ne, %1, %c0_i32_0 : i32
    scf.if %2 {
      %cst_26 = arith.constant 0.000000e+00 : f32
      %106 = vector.broadcast %cst_26 : f32 to vector<1x128xf32>
      %c0_27 = arith.constant 0 : index
      %c0_28 = arith.constant 0 : index
      %107 = vector.load %arg5[%c0_27, %c0_28] : memref<1x128xf32, #tpu.memory_space<vmem>>, vector<1x128xf32>
      tpu.vector_store %arg5[%c0_27, %c0_28], %106 {strides = array<i32>} : memref<1x128xf32, #tpu.memory_space<vmem>>, vector<1x128xf32>,
    } else {
    }
    %c0 = arith.constant 0 : index
    %c0_1 = arith.constant 0 : index
    %3 = vector.load %arg2[%c0, %c0_1] : memref<7x10xf32, #tpu.memory_space<vmem>>, vector<7x10xf32>
    %c0_2 = arith.constant 0 : index
    %c0_3 = arith.constant 0 : index
    %4 = vector.load %arg3[%c0_2, %c0_3] : memref<2x10xi32, #tpu.memory_space<vmem>>, vector<2x10xi32>
    %cst = arith.constant 0.000000e+00 : f32
    %5 = vector.broadcast %cst : f32 to vector<1x10xf32>
    %6 = vector.extract_strided_slice %4 {offsets = [0, 0], sizes = [1, 10], strides = [1, 1]} : vector<2x10xi32> to vector<1x10xi32>
    %7 = vector.extract_strided_slice %3 {offsets = [0, 0], sizes = [1, 10], strides = [1, 1]} : vector<7x10xf32> to vector<1x10xf32>
    %8 = vector.extract_strided_slice %3 {offsets = [1, 0], sizes = [1, 10], strides = [1, 1]} : vector<7x10xf32> to vector<1x10xf32>
    %9 = arith.maximumf %7, %8 : vector<1x10xf32>
    %10 = vector.extract_strided_slice %3 {offsets = [2, 0], sizes = [1, 10], strides = [1, 1]} : vector<7x10xf32> to vector<1x10xf32>
    %11 = arith.maximumf %9, %10 : vector<1x10xf32>
    %cst_4 = arith.constant 0.000000e+00 : f32
    %12 = vector.broadcast %cst_4 : f32 to vector<1x10xf32>
    %cst_5 = arith.constant 0.000000e+00 : f32
    %13 = vector.broadcast %cst_5 : f32 to vector<1x10xf32>
    %14 = vector.extract_strided_slice %3 {offsets = [0, 0], sizes = [1, 10], strides = [1, 1]} : vector<7x10xf32> to vector<1x10xf32>
    %15 = arith.subf %14, %11 : vector<1x10xf32>
    %16 = math.exp %15 : vector<1x10xf32>
    %17 = arith.addf %12, %16 : vector<1x10xf32>
    %c0_i32_6 = arith.constant 0 : i32
    %18 = vector.broadcast %c0_i32_6 : i32 to vector<1x10xi32>
    %19 = arith.cmpi eq, %6, %18 : vector<1x10xi32>
    %cst_7 = arith.constant 0.000000e+00 : f32
    %20 = vector.broadcast %cst_7 : f32 to vector<1x10xf32>
    %21 = arith.select %19, %14, %20 : vector<1x10xi1>, vector<1x10xf32>
    %22 = arith.addf %13, %21 : vector<1x10xf32>
    %23 = vector.extract_strided_slice %3 {offsets = [1, 0], sizes = [1, 10], strides = [1, 1]} : vector<7x10xf32> to vector<1x10xf32>
    %24 = arith.subf %23, %11 : vector<1x10xf32>
    %25 = math.exp %24 : vector<1x10xf32>
    %26 = arith.addf %17, %25 : vector<1x10xf32>
    %c1_i32 = arith.constant 1 : i32
    %27 = vector.broadcast %c1_i32 : i32 to vector<1x10xi32>
    %28 = arith.cmpi eq, %6, %27 : vector<1x10xi32>
    %cst_8 = arith.constant 0.000000e+00 : f32
    %29 = vector.broadcast %cst_8 : f32 to vector<1x10xf32>
    %30 = arith.select %28, %23, %29 : vector<1x10xi1>, vector<1x10xf32>
    %31 = arith.addf %22, %30 : vector<1x10xf32>
    %32 = vector.extract_strided_slice %3 {offsets = [2, 0], sizes = [1, 10], strides = [1, 1]} : vector<7x10xf32> to vector<1x10xf32>
    %33 = arith.subf %32, %11 : vector<1x10xf32>
    %34 = math.exp %33 : vector<1x10xf32>
    %35 = arith.addf %26, %34 : vector<1x10xf32>
    %c2_i32 = arith.constant 2 : i32
    %36 = vector.broadcast %c2_i32 : i32 to vector<1x10xi32>
    %37 = arith.cmpi eq, %6, %36 : vector<1x10xi32>
    %cst_9 = arith.constant 0.000000e+00 : f32
    %38 = vector.broadcast %cst_9 : f32 to vector<1x10xf32>
    %39 = arith.select %37, %32, %38 : vector<1x10xi1>, vector<1x10xf32>
    %40 = arith.addf %31, %39 : vector<1x10xf32>
    %41 = math.log %35 : vector<1x10xf32>
    %42 = arith.addf %11, %41 : vector<1x10xf32>
    %43 = arith.subf %42, %40 : vector<1x10xf32>
    %44 = arith.addf %5, %43 : vector<1x10xf32>
    %45 = vector.extract_strided_slice %4 {offsets = [1, 0], sizes = [1, 10], strides = [1, 1]} : vector<2x10xi32> to vector<1x10xi32>
    %46 = vector.extract_strided_slice %3 {offsets = [3, 0], sizes = [1, 10], strides = [1, 1]} : vector<7x10xf32> to vector<1x10xf32>
    %47 = vector.extract_strided_slice %3 {offsets = [4, 0], sizes = [1, 10], strides = [1, 1]} : vector<7x10xf32> to vector<1x10xf32>
    %48 = arith.maximumf %46, %47 : vector<1x10xf32>
    %49 = vector.extract_strided_slice %3 {offsets = [5, 0], sizes = [1, 10], strides = [1, 1]} : vector<7x10xf32> to vector<1x10xf32>
    %50 = arith.maximumf %48, %49 : vector<1x10xf32>
    %51 = vector.extract_strided_slice %3 {offsets = [6, 0], sizes = [1, 10], strides = [1, 1]} : vector<7x10xf32> to vector<1x10xf32>
    %52 = arith.maximumf %50, %51 : vector<1x10xf32>
    %cst_10 = arith.constant 0.000000e+00 : f32
    %53 = vector.broadcast %cst_10 : f32 to vector<1x10xf32>
    %cst_11 = arith.constant 0.000000e+00 : f32
    %54 = vector.broadcast %cst_11 : f32 to vector<1x10xf32>
    %55 = vector.extract_strided_slice %3 {offsets = [3, 0], sizes = [1, 10], strides = [1, 1]} : vector<7x10xf32> to vector<1x10xf32>
    %56 = arith.subf %55, %52 : vector<1x10xf32>
    %57 = math.exp %56 : vector<1x10xf32>
    %58 = arith.addf %53, %57 : vector<1x10xf32>
    %c0_i32_12 = arith.constant 0 : i32
    %59 = vector.broadcast %c0_i32_12 : i32 to vector<1x10xi32>
    %60 = arith.cmpi eq, %45, %59 : vector<1x10xi32>
    %cst_13 = arith.constant 0.000000e+00 : f32
    %61 = vector.broadcast %cst_13 : f32 to vector<1x10xf32>
    %62 = arith.select %60, %55, %61 : vector<1x10xi1>, vector<1x10xf32>
    %63 = arith.addf %54, %62 : vector<1x10xf32>
    %64 = vector.extract_strided_slice %3 {offsets = [4, 0], sizes = [1, 10], strides = [1, 1]} : vector<7x10xf32> to vector<1x10xf32>
    %65 = arith.subf %64, %52 : vector<1x10xf32>
    %66 = math.exp %65 : vector<1x10xf32>
    %67 = arith.addf %58, %66 : vector<1x10xf32>
    %c1_i32_14 = arith.constant 1 : i32
    %68 = vector.broadcast %c1_i32_14 : i32 to vector<1x10xi32>
    %69 = arith.cmpi eq, %45, %68 : vector<1x10xi32>
    %cst_15 = arith.constant 0.000000e+00 : f32
    %70 = vector.broadcast %cst_15 : f32 to vector<1x10xf32>
    %71 = arith.select %69, %64, %70 : vector<1x10xi1>, vector<1x10xf32>
    %72 = arith.addf %63, %71 : vector<1x10xf32>
    %73 = vector.extract_strided_slice %3 {offsets = [5, 0], sizes = [1, 10], strides = [1, 1]} : vector<7x10xf32> to vector<1x10xf32>
    %74 = arith.subf %73, %52 : vector<1x10xf32>
    %75 = math.exp %74 : vector<1x10xf32>
    %76 = arith.addf %67, %75 : vector<1x10xf32>
    %c2_i32_16 = arith.constant 2 : i32
    %77 = vector.broadcast %c2_i32_16 : i32 to vector<1x10xi32>
    %78 = arith.cmpi eq, %45, %77 : vector<1x10xi32>
    %cst_17 = arith.constant 0.000000e+00 : f32
    %79 = vector.broadcast %cst_17 : f32 to vector<1x10xf32>
    %80 = arith.select %78, %73, %79 : vector<1x10xi1>, vector<1x10xf32>
    %81 = arith.addf %72, %80 : vector<1x10xf32>
    %82 = vector.extract_strided_slice %3 {offsets = [6, 0], sizes = [1, 10], strides = [1, 1]} : vector<7x10xf32> to vector<1x10xf32>
    %83 = arith.subf %82, %52 : vector<1x10xf32>
    %84 = math.exp %83 : vector<1x10xf32>
    %85 = arith.addf %76, %84 : vector<1x10xf32>
    %c3_i32 = arith.constant 3 : i32
    %86 = vector.broadcast %c3_i32 : i32 to vector<1x10xi32>
    %87 = arith.cmpi eq, %45, %86 : vector<1x10xi32>
    %cst_18 = arith.constant 0.000000e+00 : f32
    %88 = vector.broadcast %cst_18 : f32 to vector<1x10xf32>
    %89 = arith.select %87, %82, %88 : vector<1x10xi1>, vector<1x10xf32>
    %90 = arith.addf %81, %89 : vector<1x10xf32>
    %91 = math.log %85 : vector<1x10xf32>
    %92 = arith.addf %52, %91 : vector<1x10xf32>
    %93 = arith.subf %92, %90 : vector<1x10xf32>
    %94 = arith.addf %44, %93 : vector<1x10xf32>
    %c0_19 = arith.constant 0 : index
    %c0_20 = arith.constant 0 : index
    %95 = vector.load %arg5[%c0_19, %c0_20] : memref<1x128xf32, #tpu.memory_space<vmem>>, vector<1x128xf32>
    %96 = vector.shape_cast %94 : vector<1x10xf32> to vector<1x1x10xf32>
    %cst_21 = arith.constant dense<0.000000e+00> : vector<1xf32>
    %97 = vector.multi_reduction <add>, %96, %cst_21 [1, 2] : vector<1x1x10xf32> to vector<1xf32>
    %98 = vector.shape_cast %97 : vector<1xf32> to vector<1x1x1xf32>
    %99 = vector.extract %98[0, 0, 0] : f32 from vector<1x1x1xf32>
    %100 = vector.broadcast %99 : f32 to vector<1x128xf32>
    %101 = arith.addf %95, %100 : vector<1x128xf32>
    %c0_22 = arith.constant 0 : index
    %c0_23 = arith.constant 0 : index
    %102 = vector.load %arg5[%c0_22, %c0_23] : memref<1x128xf32, #tpu.memory_space<vmem>>, vector<1x128xf32>
    tpu.vector_store %arg5[%c0_22, %c0_23], %101 {strides = array<i32>} : memref<1x128xf32, #tpu.memory_space<vmem>>, vector<1x128xf32>,
    %c0_i32_24 = arith.constant 0 : i32
    %103 = arith.cmpi eq, %arg1, %c0_i32_24 : i32
    %104 = arith.extui %103 : i1 to i32
    %c0_i32_25 = arith.constant 0 : i32
    %105 = arith.cmpi ne, %104, %c0_i32_25 : i32
    scf.if %105 {
      %c0_26 = arith.constant 0 : index
      %c0_27 = arith.constant 0 : index
      %106 = vector.load %arg5[%c0_26, %c0_27] : memref<1x128xf32, #tpu.memory_space<vmem>>, vector<1x128xf32>
      %107 = vector.shape_cast %106 : vector<1x128xf32> to vector<1x128xf32>
      %108 = vector.broadcast %107 : vector<1x128xf32> to vector<8x128xf32>
      %c0_28 = arith.constant 0 : index
      %c0_29 = arith.constant 0 : index
      %109 = vector.load %arg4[%c0_28, %c0_29] : memref<8x128xf32, #tpu.memory_space<vmem>>, vector<8x128xf32>
      tpu.vector_store %arg4[%c0_28, %c0_29], %108 {strides = array<i32>} : memref<8x128xf32, #tpu.memory_space<vmem>>, vector<8x128xf32>,
    } else {
    }
    return
  }
  func.func @transform_0(%arg0: i32, %arg1: i32) -> (i32, i32) {
    %c1_i32 = arith.constant 1 : i32
    %0 = arith.muli %arg0, %c1_i32 : i32
    %1 = arith.addi %0, %arg1 : i32
    %c0_i32 = arith.constant 0 : i32
    %2 = arith.minsi %1, %c0_i32 : i32
    %c0_i32_0 = arith.constant 0 : i32
    %c0_i32_1 = arith.constant 0 : i32
    return %c0_i32_0, %2 : i32, i32
  }
  func.func @transform_1(%arg0: i32, %arg1: i32) -> (i32, i32) {
    %c1_i32 = arith.constant 1 : i32
    %0 = arith.muli %arg0, %c1_i32 : i32
    %1 = arith.addi %0, %arg1 : i32
    %c0_i32 = arith.constant 0 : i32
    %2 = arith.minsi %1, %c0_i32 : i32
    %c0_i32_0 = arith.constant 0 : i32
    %c0_i32_1 = arith.constant 0 : i32
    return %c0_i32_0, %2 : i32, i32
  }
  func.func @transform_2(%arg0: i32, %arg1: i32) -> (i32, i32) {
    %c0_i32 = arith.constant 0 : i32
    %c0_i32_0 = arith.constant 0 : i32
    return %arg0, %c0_i32 : i32, i32
  }
}

</mosaic_0001>

<bundles_post_ra>
// kernel: tpu_custom_call.1
= control target key start
LH: loop header
LB: loop body
LE: loop exit
PB: predicated region body
PF: predicated region fallthrough
CT: control target
= control target key end

     0   :  { %7 = vsyncpa [#allocation4], 0  ;;  %s387_s0 = inlined_call_operand.hbm [shape: f32[7,10], index: 0, kind: input, shape index: {}]   ;;  %s388_s1 = inlined_call_operand.hbm [shape: s32[2,10], index: 1, kind: input, shape index: {}]   ;;  %s389_s2 = inlined_call_operand.hbm [shape: f32[8,128], index: 2, kind: output, shape index: {}]  }
   0x1   :  { %8 = vsyncpa [#allocation7], 0 }
   0x2   :  { %9 = vsyncpa [#allocation5], 0  ;;  %s20_s11 = sshll.u32 %s387_s0, 4  ;;  %s314_s12 = smov [#allocation3]   ;;  %s21_s11 = int_to_ptr.hbm [resolvable:$true] %s20_s11 }
   0x3   :  { %s22_s13 = sshll.u32 %s314_s12, 4  ;;  %s36_s16 = sshll.u32 %s388_s1, 4  ;;  %s23_s13 = int_to_ptr.vmem [resolvable:$true] %s22_s13  ;;  %s37_s16 = int_to_ptr.hbm [resolvable:$true] %s36_s16 }
   0x4   :  { %25 = dma.hbm_to_vmem [thread:$0]  %s21_s11, 128, %s23_s13, [#allocation4]  }
   0x5   :  { %s315_s17 = smov [#allocation6]  }
   0x6   :  { %s38_s18 = sshll.u32 %s315_s17, 4  ;;  %s39_s18 = int_to_ptr.vmem [resolvable:$true] %s38_s18 }
   0x7   :  { %41 = dma.hbm_to_vmem [thread:$0]  %s37_s16, 32, %s39_s18, [#allocation7]  }
   0x8   :  { %308 = dma.done.wait [#allocation4], 128  }
   0x9   :  { %309 = vsyncadd [#allocation4], 4294967168 }
   0xa   :  { %310 = dma.done.wait [#allocation7], 32  }
   0xb   :  { %311 = vsyncadd [#allocation7], 4294967264  ;;  %v339_v0 = vld [vmem:[#allocation3] sm:$0x7f]  ;;  %v62_v26 = vld [vmem:[#allocation6] sm:$0x3] }
   0xc   :  { %v64_v1 = vrot.slane %v339_v0, 1  ;;  %v343_v2 = vrot.slane %v339_v0, 2  ;;  %v107_v4 = vrot.slane %v339_v0, 3  ;;  %vm74_vm0 = vcmp.eq.s32.totalorder %v62_v26, 0  ;;  %s317_s1 = smov [#allocation8]   ;;  %s196_s22 = sshll.u32 %s389_s2, 4  ;;  %s197_s22 = int_to_ptr.hbm [resolvable:$true] %s196_s22 }
   0xd   :  { %vm87_vm1 = vcmp.eq.s32.totalorder %v62_v26, 1  ;;  %v137_v39 = vrot.slane %v339_v0, 4  ;;  %vm99_vm2 = vcmp.eq.s32.totalorder %v62_v26, 2  ;;  %v151_v48 = vrot.slane %v339_v0, 5  ;;  %s194_s19 = sshll.u32 %s317_s1, 4  ;;  %s195_s19 = int_to_ptr.vmem [resolvable:$true] %s194_s19 }
   0xe   :  { %v66_v3 = vmax.f32 %v339_v0, %v64_v1  ;;  %v114_v36 = vsel %vm74_vm0, %v343_v2, 0.0  ;;  %v126_v38 = vsel %vm87_vm1, %v107_v4, 0.0  ;;  %vm150_vm3 = vcmp.eq.s32.totalorder %v62_v26, 3 }
   0xf   :  { %v127_v45 = vadd.f32 %v126_v38, %v114_v36  ;;  %v139_v47 = vsel %vm99_vm2, %v137_v39, 0.0  ;;  %v75_v51 = vsel %vm74_vm0, %v339_v0, 0.0  ;;  %v88_v52 = vsel %vm87_vm1, %v64_v1, 0.0 }
  0x10   :  { %v350_v5 = vmax.f32 %v66_v3, %v343_v2  ;;  %v153_v53 = vsel %vm150_vm3, %v151_v48, 0.0  ;;  %v89_v55 = vadd.f32 %v88_v52, %v75_v51  ;;  %v100_v58 = vsel %vm99_vm2, %v343_v2, 0.0 }
  0x11   :  { %v140_v50 = vadd.f32 %v139_v47, %v127_v45  ;;  %vm167_vm4 = vcmask 73728  }
  0x12   :  { %v70_v6 = vsub.f32 %v339_v0, %v350_v5  ;;  %v78_v7 = vrot.slane %v350_v5, 7  ;;  %v90_v8 = vrot.slane %v350_v5, 6  ;;  %v357_v9 = vmax.f32 %v350_v5, %v107_v4 }
  0x13   :  { %v154_v57 = vadd.f32 %v153_v53, %v140_v50  ;;  %v101_v60 = vadd.f32 %v100_v58, %v89_v55 }
  0x14   :  { %v71_v10 = vmul.f32 1.442695, %v70_v6  ;;  %v80_v11 = vsub.f32 %v339_v0, %v78_v7  ;;  %v92_v12 = vsub.f32 %v339_v0, %v90_v8  ;;  %v110_v13 = vsub.f32 %v339_v0, %v357_v9 }
  0x15   :  { %v117_v14 = vrot.slane %v357_v9, 7  ;;  %v128_v15 = vrot.slane %v357_v9, 6  ;;  %v141_v16 = vrot.slane %v357_v9, 5  ;;  %v159_v63 = vrot.slane %v154_v57, 6 }
  0x16   :  { %v81_v17 = vmul.f32 1.442695, %v80_v11  ;;  %v93_v18 = vmul.f32 1.442695, %v92_v12  ;;  %v111_v19 = vmul.f32 1.442695, %v110_v13  ;;  %218 = vpow2.f32 %v71_v10 }
  0x17   :  { %v119_v20 = vsub.f32 %v339_v0, %v117_v14  ;;  %v130_v21 = vsub.f32 %v339_v0, %v128_v15  ;;  %v143_v22 = vsub.f32 %v339_v0, %v141_v16  ;;  %v316_v8 = vmov 0.0  }
  0x18   :  { %220 = vpow2.f32 %v81_v17  ;;  %60 = vst [vmem:[#allocation2] sm:$0x1] %v316_v8 }
  0x19   :  { %222 = vpow2.f32 %v93_v18  ;;  %v120_v23 = vmul.f32 1.442695, %v119_v20  ;;  %v131_v24 = vmul.f32 1.442695, %v130_v21  ;;  %v144_v25 = vmul.f32 1.442695, %v143_v22 }
  0x1a   :  { %224 = vpow2.f32 %v111_v19 }
  0x1b   :  { %226 = vpow2.f32 %v120_v23 }
  0x1c   :  { %228 = vpow2.f32 %v131_v24  ;;  %v219_v27 = vpop.eup %218 }
  0x1d   :  { %230 = vpow2.f32 %v144_v25 }
  0x1e   :  { %v221_v28 = vpop.eup %220 }
  0x1f   :  { %v223_v29 = vpop.eup %222  ;;  %v84_v30 = vrot.slane %v221_v28, 1  ;;  %v166_v15 = vld [vmem:[#allocation2] sm:$0x1] }
  0x20   :  { %v225_v31 = vpop.eup %224  ;;  %v96_v32 = vrot.slane %v223_v29, 2 }
  0x21   :  { %v227_v33 = vpop.eup %226  ;;  %v86_v34 = vadd.f32 %v219_v27, %v84_v30 }
  0x22   :  { %v229_v35 = vpop.eup %228  ;;  %v123_v37 = vrot.slane %v227_v33, 1 }
  0x23   :  { %v231_v40 = vpop.eup %230  ;;  %v98_v41 = vadd.f32 %v96_v32, %v86_v34  ;;  %v134_v42 = vrot.slane %v229_v35, 2 }
  0x24   :  { %v125_v43 = vadd.f32 %v225_v31, %v123_v37  ;;  %v147_v44 = vrot.slane %v231_v40, 3 }
  0x25   :  { %232 = vlog2.f32 %v98_v41 }
  0x26   :  { %v136_v46 = vadd.f32 %v134_v42, %v125_v43 }
  0x28   :  { %v149_v49 = vadd.f32 %v147_v44, %v136_v46 }
  0x2a   :  { %234 = vlog2.f32 %v149_v49 }
  0x2b   :  { %v233_v54 = vpop.eup %232 }
  0x2c   :  { %v103_v56 = vmul.f32 0.6931472, %v233_v54 }
  0x2e   :  { %v104_v61 = vadd.f32 %v103_v56, %v350_v5 }
  0x30   :  { %v235_v59 = vpop.eup %234  ;;  %v105_v0 = vsub.f32 %v104_v61, %v101_v60 }
  0x31   :  { %v156_v62 = vmul.f32 0.6931472, %v235_v59 }
  0x33   :  { %v157_v3 = vadd.f32 %v156_v62, %v357_v9 }
  0x35   :  { %v161_v4 = vsub.f32 %v157_v3, %v159_v63 }
  0x37   :  { %v163_v1 = vrot.slane %v161_v4, 3 }
  0x39   :  { %v165_v6 = vadd.f32 %v163_v1, %v105_v0 }
  0x3b   :  { %v168_v7 = vsel %vm167_vm4, %v165_v6, 0.0 }
  0x3c   :  { %169 = vadd.xlane.f32.xlu0 %v168_v7 }
  0xaf   :  { %v170_v10 = vpop.xlane.xlu0 %169 }
  0xb0   :  { %v171_v11 = vrot.slane %v170_v10, 4 }
  0xb2   :  { %v172_v2 = vadd.f32 %v171_v11, %v170_v10 }
  0xb4   :  { %v173_v12 = vrot.slane %v172_v2, 2 }
  0xb6   :  { %v174_v13 = vadd.f32 %v173_v12, %v172_v2 }
  0xb8   :  { %v175_v14 = vrot.slane %v174_v13, 1 }
  0xba   :  { %v176_v5 = vadd.f32 %v175_v14, %v174_v13 }
  0xbc   :  { %211 = vpush %v176_v5 }
  0xed   :  { %s212_s0 = spop %211 }
  0xee   :  { %v178_v9 = vstv %s212_s0 }
  0xef   :  { %v179_v16 = vadd.f32 %v178_v9, %v166_v15 }
  0xf1   :  { %180 = vst [vmem:[#allocation2] sm:$0x1] %v179_v16 }
  0xf8   :  { %v217_v17 = vld [vmem:[#allocation2] ss:$0 sm:$0xff] }
  0xf9   :  { %188 = vst [vmem:[#allocation8] sm:$0xff] %v217_v17 }
  0xfa   :  { %199 = dma.vmem_to_hbm [thread:$0]  %s195_s19, 128, %s197_s22, [#allocation5]  }
  0xfb   :  { %312 = dma.done.wait [#allocation5], 128  }
  0xfc   :  { %313 = vsyncadd [#allocation5], 4294967168 }
  0xfd   :  { %204 = vsyncpa [#allocation4], 1 }
  0xfe   :  { %205 = vsyncpa [#allocation7], 1 }
  0xff   :  { %206 = vsyncpa [#allocation5], 1 }

</bundles_post_ra>
